<compile_context>
chip_gen: v7x
topology: tpu7x:2x2x1
jax: 0.10.0
libtpu: 0.0.40
codegen_flags: <defaults>
</compile_context>

<pallas_src>
import jax
import jax.numpy as jnp
from jax.experimental import pallas as pl
from jax.experimental.pallas import tpu as pltpu

EPSILON = 1e-7  # keras K.epsilon()

CIFAR10_MEAN = (0.4914, 0.4822, 0.4465)
CIFAR10_STD = (0.2023, 0.1994, 0.201)

_INV_TWO_MINUS_EPS = 1.0 / (2.0 - EPSILON)
_INV_STD = tuple(1.0 / s for s in CIFAR10_STD)


def _prepare_kernel(scale_ref, shift_ref, x_ref, xadv_ref):
    # scale_ref/shift_ref : (1, C*HW)  resident, broadcast over sublanes
    # x_ref/xadv_ref      : (bn, C*HW) per-grid-step batch block
    xadv_ref[...] = scale_ref[...] * x_ref[...] + shift_ref[...]


def _pick_batch_block(N, CHW):
    """Batch rows per block: ~1 MiB per x block, multiple of 8 sublanes."""
    target_bytes = 1 << 20  # 1 MiB per buffer; in+out double-buffered => ~4 MiB VMEM
    cap = max(8, (target_bytes // (CHW * 4)) // 8 * 8)
    if N <= cap:
        return N  # single block; block dim == full array dim (always legal)
    return cap


def prepare_tensor(x, mask_tanh, pattern_tanh):
    """Pallas implementation of PrepareTensor.forward (intensity_range='cifar10').

    x:            (N, C, H, W) float32, already keras-preprocessed input
    mask_tanh:    (1, H, W)    float32 parameter
    pattern_tanh: (C, H, W)    float32 parameter
    returns (X_adv, mask_upsample) of shapes (N, C, H, W) and (1, C, H, W)
    """
    N, C, H, W = x.shape
    assert mask_tanh.shape == (1, H, W)
    assert pattern_tanh.shape == (C, H, W)
    assert C == len(CIFAR10_MEAN), "cifar10 normalization expects 3 channels"
    HW = H * W
    CHW = C * HW

    # ---- grid-invariant parameter math (tiny): plain JAX in the wrapper ------
    m = jnp.tanh(mask_tanh) * _INV_TWO_MINUS_EPS + 0.5                 # (1, H, W)
    p01 = jnp.tanh(pattern_tanh) * _INV_TWO_MINUS_EPS + 0.5            # (C, H, W)
    mask_upsample = jnp.tile(m, (C, 1, 1))[None]                       # (1, C, H, W)

    # Fused form of ((1-m)*x*255 + m*pattern_raw)/255 - mean) / std:
    #   xadv     = scale * x + shift
    #   scale[c] = (1 - m) / std[c]
    #   shift[c] = (m * pattern01[c] - mean[c]) / std[c]
    inv_std = jnp.asarray(_INV_STD, jnp.float32)[:, None]              # (C, 1)
    mean = jnp.asarray(CIFAR10_MEAN, jnp.float32)[:, None]             # (C, 1)
    m2 = m.reshape(1, HW)                                              # (1, HW)
    p2 = p01.reshape(C, HW)                                            # (C, HW)
    scale = ((1.0 - m2) * inv_std).reshape(1, CHW)                     # (1, C*HW)
    shift = ((m2 * p2 - mean) * inv_std).reshape(1, CHW)               # (1, C*HW)

    # ---- batch FMA kernel: lane/sublane-dense (bn, C*HW) blocks --------------
    x2 = x.reshape(N, CHW)                                             # contiguous
    bn = _pick_batch_block(N, CHW)
    grid = (pl.cdiv(N, bn),)

    grid_spec = pltpu.PrefetchScalarGridSpec(
        num_scalar_prefetch=0,
        grid=grid,
        in_specs=[
            pl.BlockSpec((1, CHW), lambda i: (0, 0)),    # scale (resident)
            pl.BlockSpec((1, CHW), lambda i: (0, 0)),    # shift (resident)
            pl.BlockSpec((bn, CHW), lambda i: (i, 0)),   # x (per batch block)
        ],
        out_specs=pl.BlockSpec((bn, CHW), lambda i: (i, 0)),
    )

    xadv2 = pl.pallas_call(
        _prepare_kernel,
        out_shape=jax.ShapeDtypeStruct((N, CHW), jnp.float32),
        grid_spec=grid_spec,
        # No scratch carry / write-once output: batch axis is fully parallel
        # (megacore-shardable on v7x; neutral on single-TC v5e/v6e).
        compiler_params=pltpu.CompilerParams(
            dimension_semantics=("parallel",)),
    )(scale, shift, x2)

    return xadv2.reshape(N, C, H, W), mask_upsample


def _reference(x, mask_tanh, pattern_tanh, epsilon=EPSILON):
    # Mirrors the PyTorch forward exactly (including the *255 / /255 round trip).
    m = jnp.tanh(mask_tanh) / (2.0 - epsilon) + 0.5                 # (1,H,W)
    C = pattern_tanh.shape[0]
    mask_up = jnp.tile(m, (C, 1, 1))[None]                          # (1,C,H,W)
    rev = 1.0 - mask_up
    pattern_raw = (jnp.tanh(pattern_tanh) / (2.0 - epsilon) + 0.5) * 255.0
    x_raw = x * 255.0
    xadv_raw = rev * x_raw + mask_up * pattern_raw
    mean = jnp.asarray(CIFAR10_MEAN, jnp.float32)[:, None, None]
    std = jnp.asarray(CIFAR10_STD, jnp.float32)[:, None, None]
    xadv = (xadv_raw / 255.0 - mean) / std
    return xadv, mask_up


if __name__ == "__main__":
    key = jax.random.PRNGKey(0)
    k1, k2, k3 = jax.random.split(key, 3)

    N, C, H, W = 2, 3, 16, 16   # img_color = 3, cifar-like spatial size
    x = jax.random.normal(k1, (N, C, H, W), jnp.float32)            # preprocessed input
    mask_tanh = jax.random.normal(k2, (1, H, W), jnp.float32) * 0.5
    pattern_tanh = jax.random.normal(k3, (C, H, W), jnp.float32) * 0.5

    xadv, mask_up = prepare_tensor(x, mask_tanh, pattern_tanh)
    jax.block_until_ready((xadv, mask_up))

    xadv_ref, mask_up_ref = _reference(x, mask_tanh, pattern_tanh)
    assert jnp.allclose(xadv, xadv_ref, atol=1e-4, rtol=1e-4)
    assert jnp.allclose(mask_up, mask_up_ref, atol=1e-5, rtol=1e-5)

    print("KERNEL_OK")
</pallas_src>

<mosaic_0001>
module attributes {stable_mosaic.version = 11 : i64} {
  func.func @_prepare_kernel(%arg0: i32, %arg1: memref<1x768xf32, #tpu.memory_space<vmem>>, %arg2: memref<1x768xf32, #tpu.memory_space<vmem>>, %arg3: memref<2x768xf32, #tpu.memory_space<vmem>>, %arg4: memref<2x768xf32, #tpu.memory_space<vmem>>) attributes {dimension_semantics = [#tpu.dimension_semantics<parallel>], iteration_bounds = array<i64: 1>, scalar_prefetch = 0 : i64, scratch_operands = 0 : i64, tpu.core_type = #tpu.core_type<tc>, window_params = [{pipeline_mode = #tpu.pipeline_mode<synchronous>, transform_indices = @transform_0, window_bounds = array<i64: 1, 768>}, {pipeline_mode = #tpu.pipeline_mode<synchronous>, transform_indices = @transform_1, window_bounds = array<i64: 1, 768>}, {transform_indices = @transform_2, window_bounds = array<i64: 2, 768>}, {transform_indices = @transform_3, window_bounds = array<i64: 2, 768>}]} {
    %c0 = arith.constant 0 : index
    %c0_0 = arith.constant 0 : index
    %0 = vector.load %arg1[%c0, %c0_0] : memref<1x768xf32, #tpu.memory_space<vmem>>, vector<1x768xf32>
    %c0_1 = arith.constant 0 : index
    %c0_2 = arith.constant 0 : index
    %1 = vector.load %arg3[%c0_1, %c0_2] : memref<2x768xf32, #tpu.memory_space<vmem>>, vector<2x768xf32>
    %2 = vector.broadcast %0 : vector<1x768xf32> to vector<2x768xf32>
    %3 = arith.mulf %2, %1 : vector<2x768xf32>
    %c0_3 = arith.constant 0 : index
    %c0_4 = arith.constant 0 : index
    %4 = vector.load %arg2[%c0_3, %c0_4] : memref<1x768xf32, #tpu.memory_space<vmem>>, vector<1x768xf32>
    %5 = vector.broadcast %4 : vector<1x768xf32> to vector<2x768xf32>
    %6 = arith.addf %3, %5 : vector<2x768xf32>
    %c0_5 = arith.constant 0 : index
    %c0_6 = arith.constant 0 : index
    %7 = vector.load %arg4[%c0_5, %c0_6] : memref<2x768xf32, #tpu.memory_space<vmem>>, vector<2x768xf32>
    tpu.vector_store %arg4[%c0_5, %c0_6], %6 {strides = array<i32>} : memref<2x768xf32, #tpu.memory_space<vmem>>, vector<2x768xf32>,
    return
  }
  func.func @transform_0(%arg0: i32) -> (i32, i32) {
    %c0_i32 = arith.constant 0 : i32
    %c0_i32_0 = arith.constant 0 : i32
    %c0_i32_1 = arith.constant 0 : i32
    return %c0_i32, %c0_i32_0 : i32, i32
  }
  func.func @transform_1(%arg0: i32) -> (i32, i32) {
    %c0_i32 = arith.constant 0 : i32
    %c0_i32_0 = arith.constant 0 : i32
    %c0_i32_1 = arith.constant 0 : i32
    return %c0_i32, %c0_i32_0 : i32, i32
  }
  func.func @transform_2(%arg0: i32) -> (i32, i32) {
    %c0_i32 = arith.constant 0 : i32
    %c0_i32_0 = arith.constant 0 : i32
    return %arg0, %c0_i32 : i32, i32
  }
  func.func @transform_3(%arg0: i32) -> (i32, i32) {
    %c0_i32 = arith.constant 0 : i32
    %c0_i32_0 = arith.constant 0 : i32
    return %arg0, %c0_i32 : i32, i32
  }
}

</mosaic_0001>

<bundles_post_ra>
// kernel: tpu_custom_call.1
= control target key start
LH: loop header
LB: loop body
LE: loop exit
PB: predicated region body
PF: predicated region fallthrough
CT: control target
= control target key end

     0   :  { %8 = vsyncpa [#allocation3], 0  ;;  %s387_s0 = inlined_call_operand.hbm [shape: f32[1,768], index: 0, kind: input, shape index: {}]   ;;  %s388_s1 = inlined_call_operand.hbm [shape: f32[1,768], index: 1, kind: input, shape index: {}]   ;;  %s389_s2 = inlined_call_operand.hbm [shape: f32[2,768], index: 2, kind: input, shape index: {}]   ;;  %s390_s3 = inlined_call_operand.hbm [shape: f32[2,768], index: 3, kind: output, shape index: {}]  }
   0x1   :  { %9 = vsyncpa [#allocation6], 0 }
   0x2   :  { %10 = vsyncpa [#allocation4], 0  ;;  %s314_s12 = smov [#allocation5]   ;;  %s315_s14 = smov [#allocation2]  }
   0x3   :  { %s27_s13 = sshll.u32 %s314_s12, 4  ;;  %s17_s15 = sshll.u32 %s315_s14, 4  ;;  %s28_s13 = int_to_ptr.vmem [resolvable:$true] %s27_s13  ;;  %s18_s15 = int_to_ptr.vmem [resolvable:$true] %s17_s15 }
   0x4   :  { %s220_s18 = scalar_lea.hbm %s388_s1, 96 }
   0x5   :  { %p221_p0 = scmp.ne.s32.totalorder %s388_s1, %s220_s18  ;;  %p224_p1 = scmp.lt.u32.totalorder %s220_s18, %s388_s1 }
   0x7   :  { %p226_p2 = pnand %p224_p1, %p221_p0 }
   0x9   :  { %229 = shalt.err (!%p226_p2)
}
   0xa   :  { %s230_s23 = scalar_lea.vmem %s28_s13, 96  ;;  %p235_p4 = scmp.lt.s32.totalorder %s28_s13, %s28_s13 }
   0xb   :  { %p231_p3 = scmp.ne.s32.totalorder %s28_s13, %s230_s23  ;;  %p236_p5 = scmp.lt.s32.totalorder %s230_s23, %s230_s23 }
   0xd   :  { %p237_p6 = por %p236_p5, %p235_p4 }
   0xf   :  { %p238_p7 = pnand %p237_p6, %p231_p3 }
  0x11   :  { %241 = shalt.err (!%p238_p7)
}
  0x12   :  { %30 = dma.hbm_to_vmem [thread:$0]  %s388_s1, 96, %s28_s13, [#allocation6]  }
  0x13   :  { %s242_s28 = scalar_lea.hbm %s387_s0, 96 }
  0x14   :  { %p243_p8 = scmp.ne.s32.totalorder %s387_s0, %s242_s28  ;;  %p246_p9 = scmp.lt.u32.totalorder %s242_s28, %s387_s0 }
  0x16   :  { %p248_p10 = pnand %p246_p9, %p243_p8 }
  0x18   :  { %251 = shalt.err (!%p248_p10)
}
  0x19   :  { %s252_s6 = scalar_lea.vmem %s18_s15, 96  ;;  %p257_p12 = scmp.lt.s32.totalorder %s18_s15, %s18_s15 }
  0x1a   :  { %p253_p11 = scmp.ne.s32.totalorder %s18_s15, %s252_s6  ;;  %p258_p13 = scmp.lt.s32.totalorder %s252_s6, %s252_s6 }
  0x1c   :  { %p259_p0 = por %p258_p13, %p257_p12 }
  0x1e   :  { %p260_p1 = pnand %p259_p0, %p253_p11 }
  0x20   :  { %263 = shalt.err (!%p260_p1)
}
  0x21   :  { %20 = dma.hbm_to_vmem [thread:$0]  %s387_s0, 96, %s18_s15, [#allocation3]  }
  0x22   :  { %s316_s8 = smov [#allocation7]   ;;  %s264_s12 = scalar_lea.hbm %s389_s2, 192 }
  0x23   :  { %s37_s9 = sshll.u32 %s316_s8, 4  ;;  %p265_p2 = scmp.ne.s32.totalorder %s389_s2, %s264_s12  ;;  %s38_s9 = int_to_ptr.vmem [resolvable:$true] %s37_s9 }
  0x24   :  { %p268_p3 = scmp.lt.u32.totalorder %s264_s12, %s389_s2 }
  0x26   :  { %p270_p4 = pnand %p268_p3, %p265_p2 }
  0x28   :  { %273 = shalt.err (!%p270_p4)
}
  0x29   :  { %s274_s18 = scalar_lea.vmem %s38_s9, 192  ;;  %p279_p6 = scmp.lt.s32.totalorder %s38_s9, %s38_s9 }
  0x2a   :  { %p275_p5 = scmp.ne.s32.totalorder %s38_s9, %s274_s18  ;;  %p280_p7 = scmp.lt.s32.totalorder %s274_s18, %s274_s18 }
  0x2c   :  { %p281_p8 = por %p280_p7, %p279_p6 }
  0x2e   :  { %p282_p9 = pnand %p281_p8, %p275_p5 }
  0x30   :  { %285 = shalt.err (!%p282_p9)
}
  0x31   :  { %40 = dma.hbm_to_vmem [thread:$0]  %s389_s2, 192, %s38_s9, [#allocation6]  }
  0x32   :  { %308 = dma.done.wait [#allocation3], 96  }
  0x33   :  { %309 = vsyncadd [#allocation3], 4294967200 }
  0x34   :  { %310 = dma.done.wait [#allocation6], 288  }
  0x35   :  { %311 = vsyncadd [#allocation6], 4294967008  ;;  %v54_v0 = vlaneseq  ;;  %v317_v1 = vmov 1983009808   ;;  %v50_v12 = vld [vmem:[#allocation2] sm:$0x3f] }
  0x36   :  { %v88_v2 = vunpack.c.l.s4 %v317_v1  ;;  %v51_v13 = vld [vmem:[#allocation7] sm:$0xff]  ;;  %v123_v14 = vld [vmem:[#allocation5] sm:$0x3f]  ;;  %s318_s2 = smov [#allocation8]  }
  0x37   :  { %v55_v3 = vshrl.u32 %v54_v0, 7  ;;  %v212_v18 = vld.sshfl [vmem:[#allocation7 + $0x8] sm:$0x33 pattern:$0x76325410]  ;;  %v86_v20 = vcombine.high %v51_v13, %v51_v13  ;;  %s202_s19 = sshll.u32 %s318_s2, 4  ;;  %s203_s19 = int_to_ptr.vmem [resolvable:$true] %s202_s19 }
  0x38   :  { %v89_v4 = vunpack.c.0.s8 %v88_v2  ;;  %v110_v30 = vcombine.high %v212_v18, %v212_v18  ;;  %s286_s20 = scalar_lea.vmem %s203_s19, 192  ;;  %p291_p11 = scmp.lt.s32.totalorder %s203_s19, %s203_s19 }
  0x39   :  { %v56_v5 = vsub.s32 0, %v55_v3  ;;  %v60_v6 = vsub.s32 1, %v55_v3  ;;  %v64_v7 = vsub.s32 2, %v55_v3  ;;  %v68_v8 = vsub.s32 3, %v55_v3  ;;  %p287_p10 = scmp.ne.s32.totalorder %s203_s19, %s286_s20  ;;  %p292_p12 = scmp.lt.s32.totalorder %s286_s20, %s286_s20 }
  0x3a   :  { %v92_v9 = vsub.s32 %v89_v4, %v55_v3  ;;  %v72_v10 = vsub.s32 4, %v55_v3  ;;  %v76_v11 = vsub.s32 5, %v55_v3 }
  0x3b   :  { %v57_v15 = vrot.slane %v50_v12, %v56_v5  ;;  %v61_v16 = vrot.slane %v50_v12, %v60_v6  ;;  %v65_v17 = vrot.slane %v50_v12, %v64_v7  ;;  %v69_v19 = vrot.slane %v50_v12, %v68_v8  ;;  %p293_p13 = por %p292_p12, %p291_p11 }
  0x3c   :  { %v93_v21 = vrot.slane %v51_v13, %v92_v9  ;;  %v128_v22 = vrot.slane %v123_v14, %v56_v5  ;;  %v132_v23 = vrot.slane %v123_v14, %v60_v6  ;;  %v136_v24 = vrot.slane %v123_v14, %v64_v7 }
  0x3d   :  { %v73_v25 = vrot.slane %v50_v12, %v72_v10  ;;  %v77_v26 = vrot.slane %v50_v12, %v76_v11  ;;  %v100_v27 = vrot.slane %v86_v20, %v92_v9  ;;  %v140_v31 = vrot.slane %v123_v14, %v68_v8  ;;  %p294_p0 = pnand %p293_p13, %p287_p10 }
  0x3e   :  { %v101_v28 = vcombine.high %v93_v21, %v93_v21  ;;  %v117_v29 = vmul.f32 %v93_v21, %v57_v15  ;;  %v144_v33 = vrot.slane %v123_v14, %v72_v10  ;;  %v148_v34 = vrot.slane %v123_v14, %v76_v11 }
  0x3f   :  { %v121_v32 = vmul.f32 %v212_v18, %v73_v25  ;;  %v102_v35 = vcombine.high %v100_v27, %v100_v27  ;;  %v119_v37 = vmul.f32 %v100_v27, %v65_v17  ;;  %v122_v39 = vmul.f32 %v110_v30, %v77_v26 }
  0x40   :  { %v118_v36 = vmul.f32 %v101_v28, %v61_v16  ;;  %v155_v38 = vadd.f32 %v128_v22, %v117_v29 }
  0x41   :  { %v159_v40 = vadd.f32 %v144_v33, %v121_v32  ;;  %v120_v41 = vmul.f32 %v102_v35, %v69_v19  ;;  %v157_v43 = vadd.f32 %v136_v24, %v119_v37  ;;  %v160_v44 = vadd.f32 %v148_v34, %v122_v39 }
  0x42   :  { %v156_v42 = vadd.f32 %v132_v23, %v118_v36 }
  0x43   :  { %v158_v45 = vadd.f32 %v140_v31, %v120_v41  ;;  %v184_v47 = vcombine.low %v159_v40, %v160_v44 }
  0x44   :  { %v167_v46 = vcombine.low %v155_v38, %v156_v42 }
  0x45   :  { %v168_v48 = vcombine.low %v157_v43, %v158_v45  ;;  %213 = vst.sshfl [vmem:[#allocation8 + $0x8] sm:$0x33 pattern:$0x76325410] %v184_v47 }
  0x46   :  { %v175_v49 = vrot.slane %v167_v46, %v92_v9 }
  0x47   :  { %v182_v50 = vrot.slane %v168_v48, %v92_v9 }
  0x49   :  { %v183_v51 = vcombine.low %v175_v49, %v182_v50 }
  0x4b   :  { %194 = vst [vmem:[#allocation8] sm:$0xff] %v183_v51 }
  0x4c   :  { %297 = shalt.err (!%p294_p0)
}
  0x4d   :  { %s298_s23 = scalar_lea.hbm %s390_s3, 192 }
  0x4e   :  { %p299_p1 = scmp.ne.s32.totalorder %s390_s3, %s298_s23  ;;  %p302_p2 = scmp.lt.u32.totalorder %s298_s23, %s390_s3 }
  0x50   :  { %p304_p3 = pnand %p302_p2, %p299_p1 }
  0x52   :  { %307 = shalt.err (!%p304_p3)
}
  0x53   :  { %205 = dma.vmem_to_hbm [thread:$0]  %s203_s19, 192, %s390_s3, [#allocation4]  }
  0x54   :  { %312 = dma.done.wait [#allocation4], 192  }
  0x55   :  { %313 = vsyncadd [#allocation4], 4294967104 }
  0x56   :  { %209 = vsyncpa [#allocation3], 1 }
  0x57   :  { %210 = vsyncpa [#allocation6], 1 }
  0x58   :  { %211 = vsyncpa [#allocation4], 1 }

</bundles_post_ra>
